<compile_context>
chip_gen: v7x
topology: tpu7x:2x2x1
jax: 0.10.0
libtpu: 0.0.40
codegen_flags: <defaults>
</compile_context>

<pallas_src>
import functools

import jax
import jax.numpy as jnp
from jax import lax
from jax.experimental import pallas as pl
from jax.experimental.pallas import tpu as pltpu

_LANES = 128
_MAX_BLOCK_ROWS = 64                    # keeps the two (rows,128) f32 accumulators small
_TARGET_STEP_BYTES = 2 * 1024 * 1024    # min HBM bytes (both inputs) per grid step


def _device_info():
    """(vmem_capacity_bytes, num_tensorcores) with conservative fallbacks."""
    vmem_cap = 64 * 1024 * 1024          # v7x per-core size: safe everywhere
    cores = 1
    try:
        info = pltpu.get_tpu_info()
        try:
            vmem_cap = int(info.vmem_capacity_bytes)
        except Exception:
            pass
        for name in ("num_cores", "core_count", "tensorcore_count", "num_tensorcores"):
            try:
                c = int(getattr(info, name))
            except Exception:
                continue
            if 1 <= c <= 16:
                cores = c
                break
    except Exception:
        pass
    return max(vmem_cap, 64 * 1024 * 1024), cores


def _pick_block_rows(total_rows: int, unit: int, num_cores: int) -> int:
    """Rows per grid block: a multiple of `unit` (sublane / pack granule),
    capped at _MAX_BLOCK_ROWS, preferring a block count divisible by the
    TensorCore count (balanced megacore split)."""
    unit = max(1, unit)
    if total_rows % unit != 0:
        # Rows not sublane-aligned: small -> one full-extent block; large ->
        # 8-aligned blocks with a ragged last block (extra sample slots are
        # sliced off outside the kernel).
        if total_rows <= _MAX_BLOCK_ROWS:
            return total_rows
        return max(8, (_MAX_BLOCK_ROWS // unit) * unit)
    cap = min(total_rows, max(unit, (_MAX_BLOCK_ROWS // unit) * unit))
    best = None
    bn = cap
    while bn >= unit:
        if total_rows % bn == 0:
            nb = total_rows // bn
            if num_cores <= 1 or nb % num_cores == 0:
                return bn
            if best is None:
                best = bn
        bn -= unit
    return best if best is not None else total_rows


def _dice_kernel(sr_ref, gt_ref, inter_out_ref, denom_out_ref,
                 inter_acc, denom_acc, *,
                 rows_per_sample, chunks, tile_d, d_valid, needs_mask, unroll):
    d = pl.program_id(1)
    k = pl.program_id(2)
    k_steps = pl.num_programs(2)
    block_rows = inter_acc.shape[0]

    @pl.when(k == 0)
    def _():
        inter_acc[...] = jnp.zeros_like(inter_acc)
        denom_acc[...] = jnp.zeros_like(denom_acc)

    if needs_mask:
        # Global column index of the first lane of this grid step.
        step_col0 = (d * k_steps + k) * tile_d
        lane = lax.broadcasted_iota(jnp.int32, (block_rows, _LANES), 1)

    def body(j, carry):
        acc_i, acc_d = carry
        c0 = pl.multiple_of(j * _LANES, _LANES)
        sr = sr_ref[:, pl.ds(c0, _LANES)].astype(jnp.float32)
        gt = gt_ref[:, pl.ds(c0, _LANES)].astype(jnp.float32)
        if needs_mask:
            valid = (step_col0 + c0 + lane) < d_valid
            sr = jnp.where(valid, sr, 0.0)
            gt = jnp.where(valid, gt, 0.0)
        return acc_i + sr * gt, acc_d + (sr + gt)

    acc_i, acc_d = lax.fori_loop(0, chunks, body,
                                 (inter_acc[...], denom_acc[...]),
                                 unroll=unroll)
    inter_acc[...] = acc_i
    denom_acc[...] = acc_d

    @pl.when(k == k_steps - 1)
    def _():
        spb = block_rows // rows_per_sample
        if rows_per_sample == 1:
            s_i = jnp.sum(inter_acc[...], axis=1, keepdims=True)            # (spb, 1)
            s_d = jnp.sum(denom_acc[...], axis=1, keepdims=True)
        else:
            ai = inter_acc[...].reshape(spb, rows_per_sample, _LANES)
            ad = denom_acc[...].reshape(spb, rows_per_sample, _LANES)
            s_i = jnp.sum(jnp.sum(ai, axis=2), axis=1, keepdims=True)        # (spb, 1)
            s_d = jnp.sum(jnp.sum(ad, axis=2), axis=1, keepdims=True)
        inter_out_ref[...] = s_i.reshape(1, 1, spb, 1)
        denom_out_ref[...] = s_d.reshape(1, 1, spb, 1)


def dice_loss(SR: jax.Array, GT: jax.Array) -> jax.Array:
    assert SR.shape == GT.shape and SR.ndim == 2, "expected (batch, features)"
    N, D = SR.shape

    vmem_cap, num_cores = _device_info()

    # --- tiny-batch sublane packing: (N, D) -> (N*R, D/R) ---------------------
    min_item = min(SR.dtype.itemsize, GT.dtype.itemsize)
    sublane = max(8, 32 // max(1, min_item))        # f32: 8, bf16: 16, int8/fp8: 32
    R = sublane if (N % sublane != 0 and D % sublane == 0) else 1
    NR, Dr = N * R, D // R
    if R != 1:
        SR = SR.reshape(NR, Dr)
        GT = GT.reshape(NR, Dr)

    # Degenerate narrow feature dim: pad to one lane group (loss-neutral zeros).
    if Dr < _LANES:
        SR = jnp.pad(SR, ((0, 0), (0, _LANES - Dr)))
        GT = jnp.pad(GT, ((0, 0), (0, _LANES - Dr)))
        Dr = _LANES

    block_rows = _pick_block_rows(NR, max(sublane, R), num_cores)
    n_blocks = pl.cdiv(NR, block_rows)
    spb = block_rows // R                            # sample slots per row block

    # --- D tiling: VMEM-budgeted (generation-aware), ragged tail via masking --
    in_bytes = SR.dtype.itemsize + GT.dtype.itemsize
    input_budget = (vmem_cap * 3) // 8               # double-buffered input tiles
    cols_cap = input_budget // (2 * block_rows * in_bytes)
    cols_total = (Dr // _LANES) * _LANES             # keep the first tile in-bounds
    tile_d = min(max(_LANES, (cols_cap // _LANES) * _LANES), cols_total)

    # Keep >=4 total grid steps for DMA/compute overlap, as long as each step
    # still moves >= _TARGET_STEP_BYTES of input.
    min_step_cols = -(-_TARGET_STEP_BYTES // (block_rows * in_bytes))
    min_step_cols = max(_LANES, -(-min_step_cols // _LANES) * _LANES)
    if n_blocks * pl.cdiv(Dr, tile_d) < 4 and tile_d > min_step_cols:
        want_k = -(-4 // n_blocks)
        alt = -(-Dr // want_k)
        alt = -(-alt // _LANES) * _LANES
        tile_d = max(min_step_cols, min(tile_d, alt))

    k_total = pl.cdiv(Dr, tile_d)
    needs_mask = (Dr % tile_d) != 0

    # v7x: when there is only one row block, split the D reduction across cores.
    d_splits = 1
    if (num_cores > 1 and n_blocks < num_cores
            and k_total >= num_cores and k_total % num_cores == 0):
        d_splits = num_cores
    k_steps = k_total // d_splits

    # Scoped VMEM limit from the real double-buffered footprint (+ headroom),
    # capped at 3/4 of physical VMEM (96 MiB v5e/v6e, 48 MiB v7x).
    dbuf_in = 2 * block_rows * tile_d * in_bytes
    scratch_bytes = 2 * block_rows * _LANES * 4
    out_bytes = 2 * 2 * spb * 4
    vmem_limit = max(32 * 1024 * 1024, dbuf_in + scratch_bytes + out_bytes + 4 * 1024 * 1024)
    vmem_limit = min(vmem_limit, (vmem_cap * 3) // 4)

    kernel = functools.partial(
        _dice_kernel,
        rows_per_sample=R,
        chunks=tile_d // _LANES,
        tile_d=tile_d,
        d_valid=Dr,
        needs_mask=needs_mask,
        unroll=min(8, max(1, tile_d // _LANES)),
    )

    def in_index(n, d, k):
        return (n, d * k_steps + k)

    def out_index(n, d, k):
        return (n, d, 0, 0)

    inter_p, denom_p = pl.pallas_call(
        kernel,
        out_shape=(
            jax.ShapeDtypeStruct((n_blocks, d_splits, spb, 1), jnp.float32),
            jax.ShapeDtypeStruct((n_blocks, d_splits, spb, 1), jnp.float32),
        ),
        grid_spec=pltpu.PrefetchScalarGridSpec(
            num_scalar_prefetch=0,
            grid=(n_blocks, d_splits, k_steps),
            in_specs=[
                pl.BlockSpec((block_rows, tile_d), in_index),
                pl.BlockSpec((block_rows, tile_d), in_index),
            ],
            out_specs=[
                pl.BlockSpec((1, 1, spb, 1), out_index),
                pl.BlockSpec((1, 1, spb, 1), out_index),
            ],
            scratch_shapes=[
                pltpu.VMEM((block_rows, _LANES), jnp.float32),  # intersection acc
                pltpu.VMEM((block_rows, _LANES), jnp.float32),  # SR + GT acc
            ],
        ),
        compiler_params=pltpu.CompilerParams(
            dimension_semantics=("parallel", "parallel", "arbitrary"),
            vmem_limit_bytes=int(vmem_limit),
        ),
    )(SR, GT)

    # Tiny O(N) combine + dice formula in plain JAX.
    inter = jnp.sum(inter_p, axis=(1, 3)).reshape(-1)[:N]
    denom = jnp.sum(denom_p, axis=(1, 3)).reshape(-1)[:N]
    smooth = jnp.float32(1.0)
    dice = (2.0 * inter + smooth) / (denom + smooth)
    return jnp.sum(1.0 - dice) / jnp.float32(N)


def dice_loss_ref(SR, GT):
    num = GT.shape[0]
    smooth = 1.0
    intersection = SR * GT
    loss = 1.0 - (2.0 * intersection.sum(1) + smooth) / (SR.sum(1) + GT.sum(1) + smooth)
    return loss.sum() / num


if __name__ == "__main__":
    # Small deterministic inputs: batch=2, features=4*16*16=1024 (flattened NCHW).
    key = jax.random.PRNGKey(0)
    k1, k2 = jax.random.split(key)
    N, D = 2, 4 * 16 * 16

    SR = jax.nn.sigmoid(jax.random.normal(k1, (N, D), dtype=jnp.float32))
    GT = (jax.random.uniform(k2, (N, D), dtype=jnp.float32) > 0.5).astype(jnp.float32)

    loss = jax.block_until_ready(dice_loss(SR, GT))
    ref = dice_loss_ref(SR, GT)
    assert jnp.allclose(loss, ref, rtol=1e-5, atol=1e-5), (loss, ref)
    print("KERNEL_OK")
</pallas_src>

<mosaic_0001>
module attributes {stable_mosaic.version = 11 : i64} {
  func.func @_dice_kernel(%arg0: i32, %arg1: i32, %arg2: i32, %arg3: memref<16x128xf32, #tpu.memory_space<vmem>>, %arg4: memref<16x128xf32, #tpu.memory_space<vmem>>, %arg5: memref<1x1x2x1xf32, #tpu.memory_space<vmem>>, %arg6: memref<1x1x2x1xf32, #tpu.memory_space<vmem>>, %arg7: memref<16x128xf32, #tpu.memory_space<vmem>>, %arg8: memref<16x128xf32, #tpu.memory_space<vmem>>) attributes {dimension_semantics = [#tpu.dimension_semantics<parallel>, #tpu.dimension_semantics<parallel>, #tpu.dimension_semantics<arbitrary>], iteration_bounds = array<i64: 1, 1, 1>, scalar_prefetch = 0 : i64, scratch_operands = 2 : i64, tpu.core_type = #tpu.core_type<tc>, window_params = [{transform_indices = @transform_0, window_bounds = array<i64: 16, 128>}, {transform_indices = @transform_1, window_bounds = array<i64: 16, 128>}, {transform_indices = @transform_2, window_bounds = array<i64: 1, 1, 2, 1>}, {transform_indices = @transform_3, window_bounds = array<i64: 1, 1, 2, 1>}]} {
    %c0_i32 = arith.constant 0 : i32
    %0 = arith.cmpi eq, %arg2, %c0_i32 : i32
    %1 = arith.extui %0 : i1 to i32
    %c0_i32_0 = arith.constant 0 : i32
    %2 = arith.cmpi ne, %1, %c0_i32_0 : i32
    scf.if %2 {
      %cst = arith.constant 0.000000e+00 : f32
      %20 = vector.broadcast %cst : f32 to vector<16x128xf32>
      %c0_13 = arith.constant 0 : index
      %c0_14 = arith.constant 0 : index
      %21 = vector.load %arg7[%c0_13, %c0_14] : memref<16x128xf32, #tpu.memory_space<vmem>>, vector<16x128xf32>
      tpu.vector_store %arg7[%c0_13, %c0_14], %20 {strides = array<i32>} : memref<16x128xf32, #tpu.memory_space<vmem>>, vector<16x128xf32>,
      %cst_15 = arith.constant 0.000000e+00 : f32
      %22 = vector.broadcast %cst_15 : f32 to vector<16x128xf32>
      %c0_16 = arith.constant 0 : index
      %c0_17 = arith.constant 0 : index
      %23 = vector.load %arg8[%c0_16, %c0_17] : memref<16x128xf32, #tpu.memory_space<vmem>>, vector<16x128xf32>
      tpu.vector_store %arg8[%c0_16, %c0_17], %22 {strides = array<i32>} : memref<16x128xf32, #tpu.memory_space<vmem>>, vector<16x128xf32>,
    } else {
    }
    %c0 = arith.constant 0 : index
    %c0_1 = arith.constant 0 : index
    %3 = vector.load %arg7[%c0, %c0_1] : memref<16x128xf32, #tpu.memory_space<vmem>>, vector<16x128xf32>
    %c0_2 = arith.constant 0 : index
    %c0_3 = arith.constant 0 : index
    %4 = vector.load %arg8[%c0_2, %c0_3] : memref<16x128xf32, #tpu.memory_space<vmem>>, vector<16x128xf32>
    %c0_i32_4 = arith.constant 0 : i32
    %c128_i32 = arith.constant 128 : i32
    %5 = arith.muli %c0_i32_4, %c128_i32 : i32
    %6 = tpu.assume_multiple %5, 128 : i32
    %c0_5 = arith.constant 0 : index
    %7 = arith.index_cast %6 : i32 to index
    %8 = vector.load %arg3[%c0_5, %7] : memref<16x128xf32, #tpu.memory_space<vmem>>, vector<16x128xf32>
    %c0_6 = arith.constant 0 : index
    %9 = arith.index_cast %6 : i32 to index
    %10 = vector.load %arg4[%c0_6, %9] : memref<16x128xf32, #tpu.memory_space<vmem>>, vector<16x128xf32>
    %11 = arith.mulf %8, %10 : vector<16x128xf32>
    %12 = arith.addf %3, %11 : vector<16x128xf32>
    %13 = arith.addf %8, %10 : vector<16x128xf32>
    %14 = arith.addf %4, %13 : vector<16x128xf32>
    %c1_i32 = arith.constant 1 : i32
    %c0_7 = arith.constant 0 : index
    %c0_8 = arith.constant 0 : index
    %15 = vector.load %arg7[%c0_7, %c0_8] : memref<16x128xf32, #tpu.memory_space<vmem>>, vector<16x128xf32>
    tpu.vector_store %arg7[%c0_7, %c0_8], %12 {strides = array<i32>} : memref<16x128xf32, #tpu.memory_space<vmem>>, vector<16x128xf32>,
    %c0_9 = arith.constant 0 : index
    %c0_10 = arith.constant 0 : index
    %16 = vector.load %arg8[%c0_9, %c0_10] : memref<16x128xf32, #tpu.memory_space<vmem>>, vector<16x128xf32>
    tpu.vector_store %arg8[%c0_9, %c0_10], %14 {strides = array<i32>} : memref<16x128xf32, #tpu.memory_space<vmem>>, vector<16x128xf32>,
    %c0_i32_11 = arith.constant 0 : i32
    %17 = arith.cmpi eq, %arg2, %c0_i32_11 : i32
    %18 = arith.extui %17 : i1 to i32
    %c0_i32_12 = arith.constant 0 : i32
    %19 = arith.cmpi ne, %18, %c0_i32_12 : i32
    scf.if %19 {
      %c0_13 = arith.constant 0 : index
      %c0_14 = arith.constant 0 : index
      %20 = vector.load %arg7[%c0_13, %c0_14] : memref<16x128xf32, #tpu.memory_space<vmem>>, vector<16x128xf32>
      %21 = vector.shape_cast %20 : vector<16x128xf32> to vector<2x8x128xf32>
      %c0_15 = arith.constant 0 : index
      %c0_16 = arith.constant 0 : index
      %22 = vector.load %arg8[%c0_15, %c0_16] : memref<16x128xf32, #tpu.memory_space<vmem>>, vector<16x128xf32>
      %23 = vector.shape_cast %22 : vector<16x128xf32> to vector<2x8x128xf32>
      %cst = arith.constant dense<0.000000e+00> : vector<2x8xf32>
      %24 = vector.multi_reduction <add>, %21, %cst [2] : vector<2x8x128xf32> to vector<2x8xf32>
      %cst_17 = arith.constant dense<0.000000e+00> : vector<2xf32>
      %25 = vector.multi_reduction <add>, %24, %cst_17 [1] : vector<2x8xf32> to vector<2xf32>
      %26 = vector.shape_cast %25 : vector<2xf32> to vector<2x1xf32>
      %cst_18 = arith.constant dense<0.000000e+00> : vector<2x8xf32>
      %27 = vector.multi_reduction <add>, %23, %cst_18 [2] : vector<2x8x128xf32> to vector<2x8xf32>
      %cst_19 = arith.constant dense<0.000000e+00> : vector<2xf32>
      %28 = vector.multi_reduction <add>, %27, %cst_19 [1] : vector<2x8xf32> to vector<2xf32>
      %29 = vector.shape_cast %28 : vector<2xf32> to vector<2x1xf32>
      %30 = vector.shape_cast %26 : vector<2x1xf32> to vector<1x1x2x1xf32>
      %c0_20 = arith.constant 0 : index
      %c0_21 = arith.constant 0 : index
      %c0_22 = arith.constant 0 : index
      %c0_23 = arith.constant 0 : index
      %31 = vector.load %arg5[%c0_20, %c0_21, %c0_22, %c0_23] : memref<1x1x2x1xf32, #tpu.memory_space<vmem>>, vector<1x1x2x1xf32>
      tpu.vector_store %arg5[%c0_20, %c0_21, %c0_22, %c0_23], %30 {strides = array<i32>} : memref<1x1x2x1xf32, #tpu.memory_space<vmem>>, vector<1x1x2x1xf32>,
      %32 = vector.shape_cast %29 : vector<2x1xf32> to vector<1x1x2x1xf32>
      %c0_24 = arith.constant 0 : index
      %c0_25 = arith.constant 0 : index
      %c0_26 = arith.constant 0 : index
      %c0_27 = arith.constant 0 : index
      %33 = vector.load %arg6[%c0_24, %c0_25, %c0_26, %c0_27] : memref<1x1x2x1xf32, #tpu.memory_space<vmem>>, vector<1x1x2x1xf32>
      tpu.vector_store %arg6[%c0_24, %c0_25, %c0_26, %c0_27], %32 {strides = array<i32>} : memref<1x1x2x1xf32, #tpu.memory_space<vmem>>, vector<1x1x2x1xf32>,
    } else {
    }
    return
  }
  func.func @transform_0(%arg0: i32, %arg1: i32, %arg2: i32) -> (i32, i32) {
    %c1_i32 = arith.constant 1 : i32
    %0 = arith.muli %arg1, %c1_i32 : i32
    %1 = arith.addi %0, %arg2 : i32
    %c0_i32 = arith.constant 0 : i32
    return %arg0, %1 : i32, i32
  }
  func.func @transform_1(%arg0: i32, %arg1: i32, %arg2: i32) -> (i32, i32) {
    %c1_i32 = arith.constant 1 : i32
    %0 = arith.muli %arg1, %c1_i32 : i32
    %1 = arith.addi %0, %arg2 : i32
    %c0_i32 = arith.constant 0 : i32
    return %arg0, %1 : i32, i32
  }
  func.func @transform_2(%arg0: i32, %arg1: i32, %arg2: i32) -> (i32, i32, i32, i32) {
    %c0_i32 = arith.constant 0 : i32
    %c0_i32_0 = arith.constant 0 : i32
    %c0_i32_1 = arith.constant 0 : i32
    return %arg0, %arg1, %c0_i32, %c0_i32_0 : i32, i32, i32, i32
  }
  func.func @transform_3(%arg0: i32, %arg1: i32, %arg2: i32) -> (i32, i32, i32, i32) {
    %c0_i32 = arith.constant 0 : i32
    %c0_i32_0 = arith.constant 0 : i32
    %c0_i32_1 = arith.constant 0 : i32
    return %arg0, %arg1, %c0_i32, %c0_i32_0 : i32, i32, i32, i32
  }
}

</mosaic_0001>

<bundles_post_ra>
// kernel: tpu_custom_call.1
= control target key start
LH: loop header
LB: loop body
LE: loop exit
PB: predicated region body
PF: predicated region fallthrough
CT: control target
= control target key end

     0   :  { %9 = vsyncpa [#allocation5], 0  ;;  %s245_s0 = inlined_call_operand.hbm [shape: f32[16,128], index: 0, kind: input, shape index: {}]   ;;  %s246_s1 = inlined_call_operand.hbm [shape: f32[16,128], index: 1, kind: input, shape index: {}]   ;;  %s247_s2 = inlined_call_operand.vmem [shape: f32[1,1,2,1], index: 2, kind: output, shape index: {0}]   ;;  %s248_s3 = inlined_call_operand.vmem [shape: f32[1,1,2,1], index: 3, kind: output, shape index: {1}]  }
   0x1   :  { %10 = vsyncpa [#allocation7], 0  ;;  %s191_s12 = smov [#allocation4]   ;;  %s143_s16 = scalar_lea.hbm %s245_s0, 256 }
   0x2   :  { %s19_s13 = sshll.u32 %s191_s12, 4  ;;  %p144_p0 = scmp.ne.s32.totalorder %s245_s0, %s143_s16  ;;  %s20_s13 = int_to_ptr.vmem [resolvable:$true] %s19_s13 }
   0x3   :  { %p147_p1 = scmp.lt.u32.totalorder %s143_s16, %s245_s0 }
   0x5   :  { %p149_p2 = pnand %p147_p1, %p144_p0 }
   0x7   :  { %152 = shalt.err (!%p149_p2)
}
   0x8   :  { %s153_s21 = scalar_lea.vmem %s20_s13, 256  ;;  %p158_p4 = scmp.lt.s32.totalorder %s20_s13, %s20_s13 }
   0x9   :  { %p154_p3 = scmp.ne.s32.totalorder %s20_s13, %s153_s21  ;;  %p159_p5 = scmp.lt.s32.totalorder %s153_s21, %s153_s21 }
   0xb   :  { %p160_p6 = por %p159_p5, %p158_p4 }
   0xd   :  { %p161_p7 = pnand %p160_p6, %p154_p3 }
   0xf   :  { %164 = shalt.err (!%p161_p7)
}
  0x10   :  { %s192_s22 = smov 128   ;;  %s193_s23 = smov 8  }
  0x11   :  { %25 = dma.hbm_to_vmem [thread:$0]  %s245_s0, 256, %s20_s13, [#allocation5], %s192_s22, %s192_s22, %s193_s23  }
  0x12   :  { %s194_s26 = smov [#allocation6]   ;;  %s165_s30 = scalar_lea.hbm %s246_s1, 256 }
  0x13   :  { %s34_s27 = sshll.u32 %s194_s26, 4  ;;  %p166_p8 = scmp.ne.s32.totalorder %s246_s1, %s165_s30  ;;  %s35_s27 = int_to_ptr.vmem [resolvable:$true] %s34_s27 }
  0x14   :  { %p169_p9 = scmp.lt.u32.totalorder %s165_s30, %s246_s1 }
  0x16   :  { %p171_p10 = pnand %p169_p9, %p166_p8 }
  0x18   :  { %174 = shalt.err (!%p171_p10)
}
  0x19   :  { %s175_s8 = scalar_lea.vmem %s35_s27, 256  ;;  %p180_p12 = scmp.lt.s32.totalorder %s35_s27, %s35_s27 }
  0x1a   :  { %p176_p11 = scmp.ne.s32.totalorder %s35_s27, %s175_s8  ;;  %p181_p13 = scmp.lt.s32.totalorder %s175_s8, %s175_s8 }
  0x1c   :  { %p182_p0 = por %p181_p13, %p180_p12 }
  0x1e   :  { %p183_p1 = pnand %p182_p0, %p176_p11 }
  0x20   :  { %186 = shalt.err (!%p183_p1)
}
  0x21   :  { %40 = dma.hbm_to_vmem [thread:$0]  %s246_s1, 256, %s35_s27, [#allocation7], %s192_s22, %s192_s22, %s193_s23  }
  0x22   :  { %187 = dma.done.wait [#allocation5], 256  }
  0x23   :  { %188 = vsyncadd [#allocation5], 4294967040 }
  0x24   :  { %189 = dma.done.wait [#allocation7], 256  }
  0x25   :  { %190 = vsyncadd [#allocation7], 4294967040  ;;  %v61_v0 = vld [vmem:[#allocation4] sm:$0xff]  ;;  %v63_v1 = vld [vmem:[#allocation6] sm:$0xff]  ;;  %v90_v8 = vlaneseq  ;;  %vm100_vm0 = vcmask 1041409   ;;  %vm103_vm1 = vcmask 58368  }
  0x26   :  { %v62_v2 = vld [vmem:[#allocation4 + $0x8] sm:$0xff]  ;;  %v69_v3 = vadd.f32 %v63_v1, %v61_v0  ;;  %v65_v4 = vmul.f32 %v63_v1, %v61_v0  ;;  %v64_v5 = vld [vmem:[#allocation6 + $0x8] sm:$0xff]  ;;  %vm126_vm2 = vcmask 1024  }
  0x27   :  { %v70_v6 = vadd.f32 %v64_v5, %v62_v2  ;;  %v66_v7 = vmul.f32 %v64_v5, %v62_v2  ;;  %v91_v9 = vand.u32 127, %v90_v8  ;;  %v93_v10 = vshrl.u32 %v90_v8, 7 }
  0x28   :  { %107 = vadd.xlane.f32.xlu1 %v69_v3  ;;  %84 = vadd.xlane.f32.xlu0 %v65_v4 }
  0x29   :  { %v94_v13 = vsub.s32 %v91_v9, %v93_v10 }
  0x2c   :  { %109 = vadd.xlane.f32.xlu1 %v70_v6  ;;  %86 = vadd.xlane.f32.xlu0 %v66_v7 }
  0xb5   :  { %v108_v11 = vpop.xlane.xlu1 %107  ;;  %v85_v12 = vpop.xlane.xlu0 %84 }
  0xb6   :  { %v116_v16 = vrot.slane %v108_v11, %v94_v13  ;;  %v95_v17 = vrot.slane %v85_v12, %v94_v13 }
  0xb9   :  { %v110_v14 = vpop.xlane.xlu1 %109  ;;  %v87_v15 = vpop.xlane.xlu0 %86 }
  0xba   :  { %v120_v18 = vrot.slane %v110_v14, %v94_v13  ;;  %v99_v19 = vrot.slane %v87_v15, %v94_v13 }
  0xbc   :  { %v121_v20 = vsel %vm100_vm0, %v120_v18, %v116_v16  ;;  %v101_v21 = vsel %vm100_vm0, %v99_v19, %v95_v17 }
  0xbd   :  { %v123_v22 = vsel %vm103_vm1, %v121_v20, 0.0  ;;  %v104_v23 = vsel %vm103_vm1, %v101_v21, 0.0 }
  0xbe   :  { %124 = vadd.xlane.f32.xlu1 %v123_v22  ;;  %105 = vadd.xlane.f32.xlu0 %v104_v23 }
 0x14b   :  { %v125_v24 = vpop.xlane.xlu1 %124  ;;  %v106_v25 = vpop.xlane.xlu0 %105 }
 0x14c   :  { %128 = vst.msk [vmem:[%s248_s3] sm:$0x3] %vm126_vm2, %v125_v24  ;;  %127 = vst.msk [vmem:[%s247_s2] sm:$0x3] %vm126_vm2, %v106_v25 }
 0x14d   :  { %137 = vsyncpa [#allocation5], 1 }
 0x14e   :  { %138 = vsyncpa [#allocation7], 1 }

</bundles_post_ra>
